<compile_context>
chip_gen: v5e
topology: v5e:2x2
jax: 0.10.0
libtpu: 0.0.40
codegen_flags: <defaults>
</compile_context>

<pallas_src>
import functools

import jax
import jax.numpy as jnp
from jax.experimental import pallas as pl
from jax.experimental.pallas import tpu as pltpu

_EPS = 1e-5
_VMEM_LIMIT = 32 * 1024 * 1024      # explicit scoped-VMEM limit (safe v5e..v7x)
_TILE_BUDGET = 14 * 1024 * 1024     # per-step working-set budget used to pick TB


def _round_up(x, m):
    return ((x + m - 1) // m) * m


def _layernorm(x, gamma, beta):
    # Exact nn.LayerNorm form: centered two-pass variance, biased, eps=1e-5.
    # The reduction width is the true feature dim (features are never padded),
    # so the mean/variance denominators are correct.
    mu = jnp.mean(x, axis=-1, keepdims=True)
    xc = x - mu
    var = jnp.mean(xc * xc, axis=-1, keepdims=True)
    return xc * jax.lax.rsqrt(var + _EPS) * gamma + beta


def _critic_kernel(state_ref, action_ref,
                   w1_ref, w2_ref, w3_ref, w4_ref, wa_ref,
                   vec_ref, out_ref, *, fc1, fc2, fc3, fc4, mxu_dtype):
    # vec_ref packs 15 small vectors as zero-padded rows of width Fmax:
    #   0: b1   1: g1   2: be1
    #   3: b2   4: g2   5: be2
    #   6: b3   7: g3   8: be3
    #   9: b4  10: g4  11: be4
    #  12: ba  13: wq (as a row)  14: bq (at column 0)
    vec = vec_ref[...]                         # load the whole table once

    def row(r, n):
        return vec[r:r + 1, 0:n]               # (1, n), broadcasts over the tile

    def dot(x, w_ref):
        # bf16 (or f32) MXU operands, f32 accumulation; LN/ReLU stay in f32.
        return jnp.dot(x.astype(mxu_dtype), w_ref[...],
                       preferred_element_type=jnp.float32)

    # --- state branch: 4x (Linear -> LayerNorm -> ReLU), last one no ReLU ---
    h = dot(state_ref[...], w1_ref) + row(0, fc1)
    h = jnp.maximum(_layernorm(h, row(1, fc1), row(2, fc1)), 0.0)

    h = dot(h, w2_ref) + row(3, fc2)
    h = jnp.maximum(_layernorm(h, row(4, fc2), row(5, fc2)), 0.0)

    h = dot(h, w3_ref) + row(6, fc3)
    h = jnp.maximum(_layernorm(h, row(7, fc3), row(8, fc3)), 0.0)

    h = dot(h, w4_ref) + row(9, fc4)
    h = _layernorm(h, row(10, fc4), row(11, fc4))     # no relu (matches torch)

    # --- action branch ---
    a = jnp.maximum(dot(action_ref[...], wa_ref) + row(12, fc4), 0.0)

    # --- merge + scalar head: VPU multiply + lane reduce (no N=1 MXU pass) ---
    sa = jnp.maximum(h + a, 0.0)               # (TB, fc4) f32
    wq_row = row(13, fc4)                      # (1, fc4)
    bq = vec[14:15, 0:1]                       # (1, 1)
    q = jnp.sum(sa * wq_row, axis=-1)          # (TB,)
    # Lane-dense store: one (1, TB) row per grid step (no masked (TB,1) column).
    out_ref[...] = q[None, :] + bq


def _pick_batch_tile(B, s_in, n_actions, fmax, w_bytes, max_batch_tile):
    """Largest batch tile whose per-step working set fits the VMEM budget."""
    # Resident weights (double-buffered by the default pipeline) + packed vecs.
    resident = 2 * w_bytes + 2 * 15 * fmax * 4
    # Per-row cost: double-buffered f32 state/action/out streams + ~8 live f32
    # activation tiles of width Fmax (h stages, LN temps, merge, bf16 copies).
    per_row = 4 * (2 * (s_in + n_actions + 1) + 8 * fmax)
    cap = max(8, (_TILE_BUDGET - resident) // per_row)

    b_round = _round_up(B, 8)
    tb = min(cap, max_batch_tile, b_round)
    tb = max(8, (tb // 8) * 8)
    # v7x megacore: keep >= 2 grid steps when the batch is big enough to split.
    if tb >= b_round and b_round >= 512:
        tb = _round_up(b_round // 2, 8)
    # When actually tiling, keep the tile a multiple of 128 rows so the
    # (1, TB) output row and the batch-tiled input DMAs stay lane-aligned.
    if tb < b_round:
        tb = max(128, (tb // 128) * 128)
    return tb


def critic_forward(state, action, params, *,
                   matmul_dtype=jnp.bfloat16, max_batch_tile=2048):
    """state: [B, input_dims*n_agents], action: [B, n_actions] -> [B, 1]."""
    B, s_in = state.shape
    n_actions = action.shape[1]
    fc1 = params["w1"].shape[1]
    fc2 = params["w2"].shape[1]
    fc3 = params["w3"].shape[1]
    fc4 = params["w4"].shape[1]
    fmax = max(fc1, fc2, fc3, fc4)

    w_elems = s_in * fc1 + fc1 * fc2 + fc2 * fc3 + fc3 * fc4 + n_actions * fc4
    w_bytes = w_elems * jnp.dtype(matmul_dtype).itemsize
    tb = _pick_batch_tile(B, s_in, n_actions, fmax, w_bytes, max_batch_tile)

    b_pad = _round_up(B, tb)
    if b_pad != B:
        state = jnp.pad(state, ((0, b_pad - B), (0, 0)))
        action = jnp.pad(action, ((0, b_pad - B), (0, 0)))
    grid = b_pad // tb

    def pad_row(x):
        x = jnp.asarray(x, jnp.float32).reshape(-1)
        return jnp.pad(x, (0, fmax - x.shape[0]))

    vecs = jnp.stack([
        pad_row(params["b1"]), pad_row(params["g1"]), pad_row(params["be1"]),
        pad_row(params["b2"]), pad_row(params["g2"]), pad_row(params["be2"]),
        pad_row(params["b3"]), pad_row(params["g3"]), pad_row(params["be3"]),
        pad_row(params["b4"]), pad_row(params["g4"]), pad_row(params["be4"]),
        pad_row(params["ba"]),
        pad_row(params["wq"]),        # (fc4, 1) flattened to a row (kept f32)
        pad_row(params["bq"]),        # scalar in column 0
    ], axis=0)                        # (15, fmax), float32

    # MXU operands in matmul_dtype (bf16 on v6e/v7x recovers full MXU rate and
    # halves weight HBM/VMEM traffic); all non-matmul math stays f32 in-kernel.
    w1 = params["w1"].astype(matmul_dtype)
    w2 = params["w2"].astype(matmul_dtype)
    w3 = params["w3"].astype(matmul_dtype)
    w4 = params["w4"].astype(matmul_dtype)
    wa = params["wa"].astype(matmul_dtype)

    kernel = functools.partial(_critic_kernel, fc1=fc1, fc2=fc2, fc3=fc3,
                               fc4=fc4, mxu_dtype=matmul_dtype)

    batch_spec = lambda cols: pl.BlockSpec((tb, cols), lambda i: (i, 0))
    resident = lambda shape: pl.BlockSpec(shape, lambda i: (0, 0))

    cost = pl.CostEstimate(
        flops=int(2 * b_pad * (w_elems + fc4)),
        transcendentals=int(4 * b_pad),                  # one rsqrt per LN row
        bytes_accessed=int(w_bytes + vecs.size * 4
                           + b_pad * (s_in + n_actions + 1) * 4),
    )

    out = pl.pallas_call(
        kernel,
        out_shape=jax.ShapeDtypeStruct((grid, tb), jnp.float32),
        grid=(grid,),
        in_specs=[
            batch_spec(s_in),                       # state  (batch tiled)
            batch_spec(n_actions),                  # action (batch tiled)
            resident((s_in, fc1)),                  # w1 (VMEM-resident)
            resident((fc1, fc2)),                   # w2
            resident((fc2, fc3)),                   # w3
            resident((fc3, fc4)),                   # w4
            resident((n_actions, fc4)),             # wa
            resident((15, fmax)),                   # packed bias/gamma/beta/wq/bq
        ],
        out_specs=pl.BlockSpec((1, tb), lambda i: (i, 0)),   # lane-dense row
        compiler_params=pltpu.CompilerParams(
            dimension_semantics=("parallel",),      # megacore shard on v7x
            vmem_limit_bytes=_VMEM_LIMIT),
        cost_estimate=cost,
    )(state, action, w1, w2, w3, w4, wa, vecs)

    # (grid, TB) row-major -> (B, 1)
    return out.reshape(-1)[:B].reshape(B, 1)


def init_params(key, input_dims, n_agents, n_actions,
                fc1_dims, fc2_dims, fc3_dims, fc4_dims):
    """Deterministic init mirroring the module's __init__ (uniform bounds)."""
    in_dims = input_dims * n_agents
    ks = jax.random.split(key, 12)

    def lin(kw, kb, fan_in, fan_out, bound):
        w = jax.random.uniform(kw, (fan_in, fan_out), jnp.float32, -bound, bound)
        b = jax.random.uniform(kb, (1, fan_out), jnp.float32, -bound, bound)
        return w, b

    f1 = 1.0 / jnp.sqrt(fc1_dims)
    f2 = 1.0 / jnp.sqrt(fc2_dims)
    f3 = 1.0 / jnp.sqrt(fc3_dims)
    f4 = 1.0 / jnp.sqrt(fc4_dims)
    f5 = 0.003

    w1, b1 = lin(ks[0], ks[1], in_dims, fc1_dims, f1)
    w2, b2 = lin(ks[2], ks[3], fc1_dims, fc2_dims, f2)
    w3, b3 = lin(ks[4], ks[5], fc2_dims, fc3_dims, f3)
    w4, b4 = lin(ks[6], ks[7], fc3_dims, fc4_dims, f4)
    # action_value uses PyTorch default Linear init; bound = 1/sqrt(fan_in)
    fa = 1.0 / jnp.sqrt(n_actions)
    wa, ba = lin(ks[8], ks[9], n_actions, fc4_dims, fa)
    wq, bq = lin(ks[10], ks[11], fc4_dims, 1, f5)

    ones = lambda d: jnp.ones((1, d), jnp.float32)
    zeros = lambda d: jnp.zeros((1, d), jnp.float32)

    return dict(
        w1=w1, b1=b1, g1=ones(fc1_dims), be1=zeros(fc1_dims),
        w2=w2, b2=b2, g2=ones(fc2_dims), be2=zeros(fc2_dims),
        w3=w3, b3=b3, g3=ones(fc3_dims), be3=zeros(fc3_dims),
        w4=w4, b4=b4, g4=ones(fc4_dims), be4=zeros(fc4_dims),
        wa=wa, ba=ba,
        wq=wq, bq=bq,
    )


def reference_forward(state, action, p):
    """Pure-JAX f32 reference (exact nn.LayerNorm variance form)."""
    def ln(x, g, b):
        mu = jnp.mean(x, axis=-1, keepdims=True)
        var = jnp.mean((x - mu) ** 2, axis=-1, keepdims=True)
        return (x - mu) / jnp.sqrt(var + _EPS) * g + b

    h = jnp.maximum(ln(state @ p["w1"] + p["b1"], p["g1"], p["be1"]), 0.0)
    h = jnp.maximum(ln(h @ p["w2"] + p["b2"], p["g2"], p["be2"]), 0.0)
    h = jnp.maximum(ln(h @ p["w3"] + p["b3"], p["g3"], p["be3"]), 0.0)
    h = ln(h @ p["w4"] + p["b4"], p["g4"], p["be4"])
    a = jnp.maximum(action @ p["wa"] + p["ba"], 0.0)
    return jnp.maximum(h + a, 0.0) @ p["wq"] + p["bq"]


if __name__ == "__main__":
    # Small, forward-consistent shapes.
    B = 8
    input_dims = 4
    n_agents = 2          # state feature dim = input_dims * n_agents = 8
    n_actions = 4
    fc1 = fc2 = fc3 = fc4 = 32

    key = jax.random.PRNGKey(0)
    k_state, k_action, k_params = jax.random.split(key, 3)

    state = jax.random.normal(k_state, (B, input_dims * n_agents), jnp.float32)
    action = jax.random.normal(k_action, (B, n_actions), jnp.float32)
    params = init_params(k_params, input_dims, n_agents, n_actions,
                         fc1, fc2, fc3, fc4)

    q_ref = reference_forward(state, action, params)

    # Exact-numerics path (f32 MXU operands): tight tolerance vs f32 reference.
    q_f32 = critic_forward(state, action, params, matmul_dtype=jnp.float32)
    q_f32 = jax.block_until_ready(q_f32)
    assert q_f32.shape == (B, 1)
    assert jnp.allclose(q_f32, q_ref, atol=1e-4, rtol=1e-4), "f32 path mismatch"

    # Default fast path (bf16 MXU operands): loosened tolerance (bf16 matmuls).
    q = critic_forward(state, action, params)
    q = jax.block_until_ready(q)
    assert q.shape == (B, 1)
    assert jnp.allclose(q, q_ref, atol=1e-2, rtol=5e-2), "bf16 path mismatch"

    print("KERNEL_OK")
</pallas_src>

<mosaic_0001>
module attributes {stable_mosaic.version = 11 : i64} {
  func.func @_critic_kernel(%arg0: i32, %arg1: memref<8x8xf32, #tpu.memory_space<vmem>>, %arg2: memref<8x4xf32, #tpu.memory_space<vmem>>, %arg3: memref<8x32xf32, #tpu.memory_space<vmem>>, %arg4: memref<32x32xf32, #tpu.memory_space<vmem>>, %arg5: memref<32x32xf32, #tpu.memory_space<vmem>>, %arg6: memref<32x32xf32, #tpu.memory_space<vmem>>, %arg7: memref<4x32xf32, #tpu.memory_space<vmem>>, %arg8: memref<15x32xf32, #tpu.memory_space<vmem>>, %arg9: memref<1x8xf32, #tpu.memory_space<vmem>>) attributes {dimension_semantics = [#tpu.dimension_semantics<parallel>], iteration_bounds = array<i64: 1>, scalar_prefetch = 0 : i64, scratch_operands = 0 : i64, tpu.core_type = #tpu.core_type<tc>, window_params = [{transform_indices = @transform_0, window_bounds = array<i64: 8, 8>}, {transform_indices = @transform_1, window_bounds = array<i64: 8, 4>}, {pipeline_mode = #tpu.pipeline_mode<synchronous>, transform_indices = @transform_2, window_bounds = array<i64: 8, 32>}, {pipeline_mode = #tpu.pipeline_mode<synchronous>, transform_indices = @transform_3, window_bounds = array<i64: 32, 32>}, {pipeline_mode = #tpu.pipeline_mode<synchronous>, transform_indices = @transform_4, window_bounds = array<i64: 32, 32>}, {pipeline_mode = #tpu.pipeline_mode<synchronous>, transform_indices = @transform_5, window_bounds = array<i64: 32, 32>}, {pipeline_mode = #tpu.pipeline_mode<synchronous>, transform_indices = @transform_6, window_bounds = array<i64: 4, 32>}, {pipeline_mode = #tpu.pipeline_mode<synchronous>, transform_indices = @transform_7, window_bounds = array<i64: 15, 32>}, {transform_indices = @transform_8, window_bounds = array<i64: 1, 8>}]} {
    %c0 = arith.constant 0 : index
    %c0_0 = arith.constant 0 : index
    %0 = vector.load %arg8[%c0, %c0_0] : memref<15x32xf32, #tpu.memory_space<vmem>>, vector<15x32xf32>
    %c0_1 = arith.constant 0 : index
    %c0_2 = arith.constant 0 : index
    %1 = vector.load %arg1[%c0_1, %c0_2] : memref<8x8xf32, #tpu.memory_space<vmem>>, vector<8x8xf32>
    %c0_3 = arith.constant 0 : index
    %c0_4 = arith.constant 0 : index
    %2 = vector.load %arg3[%c0_3, %c0_4] : memref<8x32xf32, #tpu.memory_space<vmem>>, vector<8x32xf32>
    %cst = arith.constant dense<0.000000e+00> : vector<8x32xf32>
    %3 = tpu.matmul %1, %2, %cst {dimension_numbers = #tpu.dot_dimension_numbers<[1], [0], [0], [1], [0, 0, 1, 1], [], []>} : vector<8x8xf32>, vector<8x32xf32>, vector<8x32xf32> -> vector<8x32xf32>
    %4 = vector.extract_strided_slice %0 {offsets = [0, 0], sizes = [1, 32], strides = [1, 1]} : vector<15x32xf32> to vector<1x32xf32>
    %5 = vector.broadcast %4 : vector<1x32xf32> to vector<8x32xf32>
    %6 = arith.addf %3, %5 : vector<8x32xf32>
    %7 = vector.extract_strided_slice %0 {offsets = [1, 0], sizes = [1, 32], strides = [1, 1]} : vector<15x32xf32> to vector<1x32xf32>
    %8 = vector.extract_strided_slice %0 {offsets = [2, 0], sizes = [1, 32], strides = [1, 1]} : vector<15x32xf32> to vector<1x32xf32>
    %cst_5 = arith.constant dense<0.000000e+00> : vector<8xf32>
    %9 = vector.multi_reduction <add>, %6, %cst_5 [1] : vector<8x32xf32> to vector<8xf32>
    %10 = vector.shape_cast %9 : vector<8xf32> to vector<8x1xf32>
    %cst_6 = arith.constant 3.200000e+01 : f32
    %11 = vector.broadcast %cst_6 : f32 to vector<8x1xf32>
    %12 = arith.divf %10, %11 : vector<8x1xf32>
    %13 = vector.broadcast %12 : vector<8x1xf32> to vector<8x32xf32>
    %14 = arith.subf %6, %13 : vector<8x32xf32>
    %15 = arith.mulf %14, %14 : vector<8x32xf32>
    %cst_7 = arith.constant dense<0.000000e+00> : vector<8xf32>
    %16 = vector.multi_reduction <add>, %15, %cst_7 [1] : vector<8x32xf32> to vector<8xf32>
    %17 = vector.shape_cast %16 : vector<8xf32> to vector<8x1xf32>
    %cst_8 = arith.constant 3.200000e+01 : f32
    %18 = vector.broadcast %cst_8 : f32 to vector<8x1xf32>
    %19 = arith.divf %17, %18 : vector<8x1xf32>
    %cst_9 = arith.constant 9.99999974E-6 : f32
    %20 = vector.broadcast %cst_9 : f32 to vector<8x1xf32>
    %21 = arith.addf %19, %20 : vector<8x1xf32>
    %22 = math.rsqrt %21 : vector<8x1xf32>
    %23 = vector.broadcast %22 : vector<8x1xf32> to vector<8x32xf32>
    %24 = arith.mulf %14, %23 : vector<8x32xf32>
    %25 = vector.broadcast %7 : vector<1x32xf32> to vector<8x32xf32>
    %26 = arith.mulf %24, %25 : vector<8x32xf32>
    %27 = vector.broadcast %8 : vector<1x32xf32> to vector<8x32xf32>
    %28 = arith.addf %26, %27 : vector<8x32xf32>
    %cst_10 = arith.constant 0.000000e+00 : f32
    %29 = vector.broadcast %cst_10 : f32 to vector<8x32xf32>
    %30 = arith.maximumf %28, %29 : vector<8x32xf32>
    %c0_11 = arith.constant 0 : index
    %c0_12 = arith.constant 0 : index
    %31 = vector.load %arg4[%c0_11, %c0_12] : memref<32x32xf32, #tpu.memory_space<vmem>>, vector<32x32xf32>
    %cst_13 = arith.constant dense<0.000000e+00> : vector<8x32xf32>
    %32 = tpu.matmul %30, %31, %cst_13 {dimension_numbers = #tpu.dot_dimension_numbers<[1], [0], [0], [1], [0, 0, 1, 1], [], []>} : vector<8x32xf32>, vector<32x32xf32>, vector<8x32xf32> -> vector<8x32xf32>
    %33 = vector.extract_strided_slice %0 {offsets = [3, 0], sizes = [1, 32], strides = [1, 1]} : vector<15x32xf32> to vector<1x32xf32>
    %34 = vector.broadcast %33 : vector<1x32xf32> to vector<8x32xf32>
    %35 = arith.addf %32, %34 : vector<8x32xf32>
    %36 = vector.extract_strided_slice %0 {offsets = [4, 0], sizes = [1, 32], strides = [1, 1]} : vector<15x32xf32> to vector<1x32xf32>
    %37 = vector.extract_strided_slice %0 {offsets = [5, 0], sizes = [1, 32], strides = [1, 1]} : vector<15x32xf32> to vector<1x32xf32>
    %cst_14 = arith.constant dense<0.000000e+00> : vector<8xf32>
    %38 = vector.multi_reduction <add>, %35, %cst_14 [1] : vector<8x32xf32> to vector<8xf32>
    %39 = vector.shape_cast %38 : vector<8xf32> to vector<8x1xf32>
    %cst_15 = arith.constant 3.200000e+01 : f32
    %40 = vector.broadcast %cst_15 : f32 to vector<8x1xf32>
    %41 = arith.divf %39, %40 : vector<8x1xf32>
    %42 = vector.broadcast %41 : vector<8x1xf32> to vector<8x32xf32>
    %43 = arith.subf %35, %42 : vector<8x32xf32>
    %44 = arith.mulf %43, %43 : vector<8x32xf32>
    %cst_16 = arith.constant dense<0.000000e+00> : vector<8xf32>
    %45 = vector.multi_reduction <add>, %44, %cst_16 [1] : vector<8x32xf32> to vector<8xf32>
    %46 = vector.shape_cast %45 : vector<8xf32> to vector<8x1xf32>
    %cst_17 = arith.constant 3.200000e+01 : f32
    %47 = vector.broadcast %cst_17 : f32 to vector<8x1xf32>
    %48 = arith.divf %46, %47 : vector<8x1xf32>
    %cst_18 = arith.constant 9.99999974E-6 : f32
    %49 = vector.broadcast %cst_18 : f32 to vector<8x1xf32>
    %50 = arith.addf %48, %49 : vector<8x1xf32>
    %51 = math.rsqrt %50 : vector<8x1xf32>
    %52 = vector.broadcast %51 : vector<8x1xf32> to vector<8x32xf32>
    %53 = arith.mulf %43, %52 : vector<8x32xf32>
    %54 = vector.broadcast %36 : vector<1x32xf32> to vector<8x32xf32>
    %55 = arith.mulf %53, %54 : vector<8x32xf32>
    %56 = vector.broadcast %37 : vector<1x32xf32> to vector<8x32xf32>
    %57 = arith.addf %55, %56 : vector<8x32xf32>
    %cst_19 = arith.constant 0.000000e+00 : f32
    %58 = vector.broadcast %cst_19 : f32 to vector<8x32xf32>
    %59 = arith.maximumf %57, %58 : vector<8x32xf32>
    %c0_20 = arith.constant 0 : index
    %c0_21 = arith.constant 0 : index
    %60 = vector.load %arg5[%c0_20, %c0_21] : memref<32x32xf32, #tpu.memory_space<vmem>>, vector<32x32xf32>
    %cst_22 = arith.constant dense<0.000000e+00> : vector<8x32xf32>
    %61 = tpu.matmul %59, %60, %cst_22 {dimension_numbers = #tpu.dot_dimension_numbers<[1], [0], [0], [1], [0, 0, 1, 1], [], []>} : vector<8x32xf32>, vector<32x32xf32>, vector<8x32xf32> -> vector<8x32xf32>
    %62 = vector.extract_strided_slice %0 {offsets = [6, 0], sizes = [1, 32], strides = [1, 1]} : vector<15x32xf32> to vector<1x32xf32>
    %63 = vector.broadcast %62 : vector<1x32xf32> to vector<8x32xf32>
    %64 = arith.addf %61, %63 : vector<8x32xf32>
    %65 = vector.extract_strided_slice %0 {offsets = [7, 0], sizes = [1, 32], strides = [1, 1]} : vector<15x32xf32> to vector<1x32xf32>
    %66 = vector.extract_strided_slice %0 {offsets = [8, 0], sizes = [1, 32], strides = [1, 1]} : vector<15x32xf32> to vector<1x32xf32>
    %cst_23 = arith.constant dense<0.000000e+00> : vector<8xf32>
    %67 = vector.multi_reduction <add>, %64, %cst_23 [1] : vector<8x32xf32> to vector<8xf32>
    %68 = vector.shape_cast %67 : vector<8xf32> to vector<8x1xf32>
    %cst_24 = arith.constant 3.200000e+01 : f32
    %69 = vector.broadcast %cst_24 : f32 to vector<8x1xf32>
    %70 = arith.divf %68, %69 : vector<8x1xf32>
    %71 = vector.broadcast %70 : vector<8x1xf32> to vector<8x32xf32>
    %72 = arith.subf %64, %71 : vector<8x32xf32>
    %73 = arith.mulf %72, %72 : vector<8x32xf32>
    %cst_25 = arith.constant dense<0.000000e+00> : vector<8xf32>
    %74 = vector.multi_reduction <add>, %73, %cst_25 [1] : vector<8x32xf32> to vector<8xf32>
    %75 = vector.shape_cast %74 : vector<8xf32> to vector<8x1xf32>
    %cst_26 = arith.constant 3.200000e+01 : f32
    %76 = vector.broadcast %cst_26 : f32 to vector<8x1xf32>
    %77 = arith.divf %75, %76 : vector<8x1xf32>
    %cst_27 = arith.constant 9.99999974E-6 : f32
    %78 = vector.broadcast %cst_27 : f32 to vector<8x1xf32>
    %79 = arith.addf %77, %78 : vector<8x1xf32>
    %80 = math.rsqrt %79 : vector<8x1xf32>
    %81 = vector.broadcast %80 : vector<8x1xf32> to vector<8x32xf32>
    %82 = arith.mulf %72, %81 : vector<8x32xf32>
    %83 = vector.broadcast %65 : vector<1x32xf32> to vector<8x32xf32>
    %84 = arith.mulf %82, %83 : vector<8x32xf32>
    %85 = vector.broadcast %66 : vector<1x32xf32> to vector<8x32xf32>
    %86 = arith.addf %84, %85 : vector<8x32xf32>
    %cst_28 = arith.constant 0.000000e+00 : f32
    %87 = vector.broadcast %cst_28 : f32 to vector<8x32xf32>
    %88 = arith.maximumf %86, %87 : vector<8x32xf32>
    %c0_29 = arith.constant 0 : index
    %c0_30 = arith.constant 0 : index
    %89 = vector.load %arg6[%c0_29, %c0_30] : memref<32x32xf32, #tpu.memory_space<vmem>>, vector<32x32xf32>
    %cst_31 = arith.constant dense<0.000000e+00> : vector<8x32xf32>
    %90 = tpu.matmul %88, %89, %cst_31 {dimension_numbers = #tpu.dot_dimension_numbers<[1], [0], [0], [1], [0, 0, 1, 1], [], []>} : vector<8x32xf32>, vector<32x32xf32>, vector<8x32xf32> -> vector<8x32xf32>
    %91 = vector.extract_strided_slice %0 {offsets = [9, 0], sizes = [1, 32], strides = [1, 1]} : vector<15x32xf32> to vector<1x32xf32>
    %92 = vector.broadcast %91 : vector<1x32xf32> to vector<8x32xf32>
    %93 = arith.addf %90, %92 : vector<8x32xf32>
    %94 = vector.extract_strided_slice %0 {offsets = [10, 0], sizes = [1, 32], strides = [1, 1]} : vector<15x32xf32> to vector<1x32xf32>
    %95 = vector.extract_strided_slice %0 {offsets = [11, 0], sizes = [1, 32], strides = [1, 1]} : vector<15x32xf32> to vector<1x32xf32>
    %cst_32 = arith.constant dense<0.000000e+00> : vector<8xf32>
    %96 = vector.multi_reduction <add>, %93, %cst_32 [1] : vector<8x32xf32> to vector<8xf32>
    %97 = vector.shape_cast %96 : vector<8xf32> to vector<8x1xf32>
    %cst_33 = arith.constant 3.200000e+01 : f32
    %98 = vector.broadcast %cst_33 : f32 to vector<8x1xf32>
    %99 = arith.divf %97, %98 : vector<8x1xf32>
    %100 = vector.broadcast %99 : vector<8x1xf32> to vector<8x32xf32>
    %101 = arith.subf %93, %100 : vector<8x32xf32>
    %102 = arith.mulf %101, %101 : vector<8x32xf32>
    %cst_34 = arith.constant dense<0.000000e+00> : vector<8xf32>
    %103 = vector.multi_reduction <add>, %102, %cst_34 [1] : vector<8x32xf32> to vector<8xf32>
    %104 = vector.shape_cast %103 : vector<8xf32> to vector<8x1xf32>
    %cst_35 = arith.constant 3.200000e+01 : f32
    %105 = vector.broadcast %cst_35 : f32 to vector<8x1xf32>
    %106 = arith.divf %104, %105 : vector<8x1xf32>
    %cst_36 = arith.constant 9.99999974E-6 : f32
    %107 = vector.broadcast %cst_36 : f32 to vector<8x1xf32>
    %108 = arith.addf %106, %107 : vector<8x1xf32>
    %109 = math.rsqrt %108 : vector<8x1xf32>
    %110 = vector.broadcast %109 : vector<8x1xf32> to vector<8x32xf32>
    %111 = arith.mulf %101, %110 : vector<8x32xf32>
    %112 = vector.broadcast %94 : vector<1x32xf32> to vector<8x32xf32>
    %113 = arith.mulf %111, %112 : vector<8x32xf32>
    %114 = vector.broadcast %95 : vector<1x32xf32> to vector<8x32xf32>
    %115 = arith.addf %113, %114 : vector<8x32xf32>
    %c0_37 = arith.constant 0 : index
    %c0_38 = arith.constant 0 : index
    %116 = vector.load %arg2[%c0_37, %c0_38] : memref<8x4xf32, #tpu.memory_space<vmem>>, vector<8x4xf32>
    %c0_39 = arith.constant 0 : index
    %c0_40 = arith.constant 0 : index
    %117 = vector.load %arg7[%c0_39, %c0_40] : memref<4x32xf32, #tpu.memory_space<vmem>>, vector<4x32xf32>
    %cst_41 = arith.constant dense<0.000000e+00> : vector<8x32xf32>
    %118 = tpu.matmul %116, %117, %cst_41 {dimension_numbers = #tpu.dot_dimension_numbers<[1], [0], [0], [1], [0, 0, 1, 1], [], []>} : vector<8x4xf32>, vector<4x32xf32>, vector<8x32xf32> -> vector<8x32xf32>
    %119 = vector.extract_strided_slice %0 {offsets = [12, 0], sizes = [1, 32], strides = [1, 1]} : vector<15x32xf32> to vector<1x32xf32>
    %120 = vector.broadcast %119 : vector<1x32xf32> to vector<8x32xf32>
    %121 = arith.addf %118, %120 : vector<8x32xf32>
    %cst_42 = arith.constant 0.000000e+00 : f32
    %122 = vector.broadcast %cst_42 : f32 to vector<8x32xf32>
    %123 = arith.maximumf %121, %122 : vector<8x32xf32>
    %124 = arith.addf %115, %123 : vector<8x32xf32>
    %cst_43 = arith.constant 0.000000e+00 : f32
    %125 = vector.broadcast %cst_43 : f32 to vector<8x32xf32>
    %126 = arith.maximumf %124, %125 : vector<8x32xf32>
    %127 = vector.extract_strided_slice %0 {offsets = [13, 0], sizes = [1, 32], strides = [1, 1]} : vector<15x32xf32> to vector<1x32xf32>
    %128 = vector.extract_strided_slice %0 {offsets = [14, 0], sizes = [1, 1], strides = [1, 1]} : vector<15x32xf32> to vector<1x1xf32>
    %129 = vector.broadcast %127 : vector<1x32xf32> to vector<8x32xf32>
    %130 = arith.mulf %126, %129 : vector<8x32xf32>
    %cst_44 = arith.constant dense<0.000000e+00> : vector<8xf32>
    %131 = vector.multi_reduction <add>, %130, %cst_44 [1] : vector<8x32xf32> to vector<8xf32>
    %132 = vector.shape_cast %131 : vector<8xf32> to vector<1x8xf32>
    %133 = vector.broadcast %128 : vector<1x1xf32> to vector<1x8xf32>
    %134 = arith.addf %132, %133 : vector<1x8xf32>
    %c0_45 = arith.constant 0 : index
    %c0_46 = arith.constant 0 : index
    %135 = vector.load %arg9[%c0_45, %c0_46] : memref<1x8xf32, #tpu.memory_space<vmem>>, vector<1x8xf32>
    tpu.vector_store %arg9[%c0_45, %c0_46], %134 {strides = array<i32>} : memref<1x8xf32, #tpu.memory_space<vmem>>, vector<1x8xf32>,
    return
  }
  func.func @transform_0(%arg0: i32) -> (i32, i32) {
    %c0_i32 = arith.constant 0 : i32
    %c0_i32_0 = arith.constant 0 : i32
    return %arg0, %c0_i32 : i32, i32
  }
  func.func @transform_1(%arg0: i32) -> (i32, i32) {
    %c0_i32 = arith.constant 0 : i32
    %c0_i32_0 = arith.constant 0 : i32
    return %arg0, %c0_i32 : i32, i32
  }
  func.func @transform_2(%arg0: i32) -> (i32, i32) {
    %c0_i32 = arith.constant 0 : i32
    %c0_i32_0 = arith.constant 0 : i32
    %c0_i32_1 = arith.constant 0 : i32
    return %c0_i32, %c0_i32_0 : i32, i32
  }
  func.func @transform_3(%arg0: i32) -> (i32, i32) {
    %c0_i32 = arith.constant 0 : i32
    %c0_i32_0 = arith.constant 0 : i32
    %c0_i32_1 = arith.constant 0 : i32
    return %c0_i32, %c0_i32_0 : i32, i32
  }
  func.func @transform_4(%arg0: i32) -> (i32, i32) {
    %c0_i32 = arith.constant 0 : i32
    %c0_i32_0 = arith.constant 0 : i32
    %c0_i32_1 = arith.constant 0 : i32
    return %c0_i32, %c0_i32_0 : i32, i32
  }
  func.func @transform_5(%arg0: i32) -> (i32, i32) {
    %c0_i32 = arith.constant 0 : i32
    %c0_i32_0 = arith.constant 0 : i32
    %c0_i32_1 = arith.constant 0 : i32
    return %c0_i32, %c0_i32_0 : i32, i32
  }
  func.func @transform_6(%arg0: i32) -> (i32, i32) {
    %c0_i32 = arith.constant 0 : i32
    %c0_i32_0 = arith.constant 0 : i32
    %c0_i32_1 = arith.constant 0 : i32
    return %c0_i32, %c0_i32_0 : i32, i32
  }
  func.func @transform_7(%arg0: i32) -> (i32, i32) {
    %c0_i32 = arith.constant 0 : i32
    %c0_i32_0 = arith.constant 0 : i32
    %c0_i32_1 = arith.constant 0 : i32
    return %c0_i32, %c0_i32_0 : i32, i32
  }
  func.func @transform_8(%arg0: i32) -> (i32, i32) {
    %c0_i32 = arith.constant 0 : i32
    %c0_i32_0 = arith.constant 0 : i32
    return %arg0, %c0_i32 : i32, i32
  }
}

</mosaic_0001>

<bundles_post_ra>
// kernel: tpu_custom_call.1
= control target key start
LH: loop header
LB: loop body
LE: loop exit
PB: predicated region body
PF: predicated region fallthrough
CT: control target
= control target key end

     0   :  { %13 = vsyncpa [#allocation3], 0  ;;  %s748_s0 = inlined_call_operand.hbm [shape: f32[8,8], index: 0, kind: input, shape index: {}]   ;;  %s749_s1 = inlined_call_operand.vmem [shape: f32[8,4], index: 1, kind: input, shape index: {}]   ;;  %s750_s2 = inlined_call_operand.hbm [shape: f32[8,32], index: 2, kind: input, shape index: {}]   ;;  %s751_s3 = inlined_call_operand.hbm [shape: f32[32,32], index: 3, kind: input, shape index: {}]   ;;  %s752_s4 = inlined_call_operand.hbm [shape: f32[32,32], index: 4, kind: input, shape index: {}]   ;;  %s753_s5 = inlined_call_operand.hbm [shape: f32[32,32], index: 5, kind: input, shape index: {}]   ;;  %s754_s6 = inlined_call_operand.hbm [shape: f32[4,32], index: 6, kind: input, shape index: {}]   ;;  %s755_s7 = inlined_call_operand.vmem [shape: f32[15,32], index: 7, kind: input, shape index: {}]   ;;  %s756_s8 = inlined_call_operand.hbm [shape: f32[1,8], index: 8, kind: output, shape index: {}]  }
   0x1   :  { %14 = vsyncpa [#allocation6], 0 }
   0x2   :  { %15 = vsyncpa [#allocation9], 0 }
   0x3   :  { %16 = vsyncpa [#allocation12], 0  ;;  %s36_s29 = sshll.u32 %s750_s2, 4  ;;  %s37_s29 = int_to_ptr.hbm [resolvable:$true] %s36_s29 }
   0x4   :  { %17 = vsyncpa [#allocation4], 0  ;;  %s630_s30 = smov [#allocation5]   ;;  %s59_s12 = sshll.u32 %s752_s4, 4  ;;  %s60_s12 = int_to_ptr.hbm [resolvable:$true] %s59_s12 }
   0x5   :  { %s38_s9 = sshll.u32 %s630_s30, 4  ;;  %s631_s13 = smov [#allocation8]   ;;  %s39_s9 = int_to_ptr.vmem [resolvable:$true] %s38_s9 }
   0x6   :  { %41 = dma.hbm_to_vmem [thread:$0]  %s37_s29, 128, %s39_s9, [#allocation6]  }
   0x7   :  { %s61_s14 = sshll.u32 %s631_s13, 4  ;;  %s23_s17 = sshll.u32 %s748_s0, 4  ;;  %s62_s14 = int_to_ptr.vmem [resolvable:$true] %s61_s14  ;;  %s24_s17 = int_to_ptr.hbm [resolvable:$true] %s23_s17 }
   0x8   :  { %s632_s2 = smov 128   ;;  %s633_s18 = smov 8  }
   0x9   :  { %67 = dma.hbm_to_vmem [thread:$0]  %s60_s12, 512, %s62_s14, [#allocation9], %s632_s2, %s632_s2, %s633_s18  }
   0xa   :  { %s46_s21 = sshll.u32 %s751_s3, 4  ;;  %s634_s22 = smov [#allocation2]   ;;  %s47_s21 = int_to_ptr.hbm [resolvable:$true] %s46_s21 }
   0xb   :  { %s25_s23 = sshll.u32 %s634_s22, 4  ;;  %s635_s4 = smov [#allocation7]   ;;  %s26_s23 = int_to_ptr.vmem [resolvable:$true] %s25_s23 }
   0xc   :  { %28 = dma.hbm_to_vmem [thread:$0]  %s24_s17, 128, %s26_s23, [#allocation3]  }
   0xd   :  { %s48_s24 = sshll.u32 %s635_s4, 4  ;;  %s72_s0 = sshll.u32 %s753_s5, 4  ;;  %s49_s24 = int_to_ptr.vmem [resolvable:$true] %s48_s24  ;;  %s73_s0 = int_to_ptr.hbm [resolvable:$true] %s72_s0 }
   0xe   :  { %54 = dma.hbm_to_vmem [thread:$0]  %s47_s21, 512, %s49_s24, [#allocation6], %s632_s2, %s632_s2, %s633_s18  }
   0xf   :  { %s86_s29 = sshll.u32 %s754_s6, 4  ;;  %s636_s30 = smov [#allocation10]   ;;  %s87_s29 = int_to_ptr.hbm [resolvable:$true] %s86_s29 }
  0x10   :  { %s74_s3 = sshll.u32 %s636_s30, 4  ;;  %s637_s9 = smov [#allocation11]   ;;  %s75_s3 = int_to_ptr.vmem [resolvable:$true] %s74_s3 }
  0x11   :  { %80 = dma.hbm_to_vmem [thread:$0]  %s73_s0, 512, %s75_s3, [#allocation9], %s632_s2, %s632_s2, %s633_s18  }
  0x12   :  { %s88_s10 = sshll.u32 %s637_s9, 4  ;;  %s89_s10 = int_to_ptr.vmem [resolvable:$true] %s88_s10 }
  0x13   :  { %91 = dma.hbm_to_vmem [thread:$0]  %s87_s29, 64, %s89_s10, [#allocation12]  }
  0x14   :  { %620 = dma.done.wait [#allocation3], 128  }
  0x15   :  { %621 = vsyncadd [#allocation3], 4294967168 }
  0x16   :  { %622 = dma.done.wait [#allocation6], 640  }
  0x17   :  { %623 = vsyncadd [#allocation6], 4294966656 }
  0x18   :  { %624 = dma.done.wait [#allocation9], 1024  }
  0x19   :  { %625 = vsyncadd [#allocation9], 4294966272 }
  0x1a   :  { %626 = dma.done.wait [#allocation12], 64  }
  0x1b   :  { %627 = vsyncadd [#allocation12], 4294967232  ;;  %vm123_vm0 = vcmask 64512   ;;  %v121_v0 = vld [vmem:[#allocation5] sm:$0xff]  ;;  %v120_v1 = vld [vmem:[#allocation2] sm:$0xff]  ;;  %vm147_vm1 = vcmask 261120  }
  0x1c   :  { %142 = vmatpush.msra.mxu0 %v121_v0  ;;  %v707_v2 = vld [vmem:[%s755_s7] sm:$0xff]  ;;  %v638_v7 = vmov 32.0   ;;  %v185_v19 = vld [vmem:[#allocation7 + $0x18] sm:$0xff]  ;;  %v183_v21 = vld [vmem:[#allocation7 + $0x8] sm:$0xff]  ;;  %vm353_vm12 = vcmask 1043456   ;;  %vm349_vm13 = vcmask 31744  }
  0x1d   :  { %422 = vmatmul.msk.f32.vlgmr.msra.gmra.mxu0 %vm123_vm0, %v120_v1  ;;  %v122_v3 = vperm.slane %v707_v2, 0  ;;  %442 = vrcp.f32 %v638_v7  ;;  %v184_v20 = vld [vmem:[#allocation7 + $0x10] sm:$0xff]  ;;  %202 = vmatpush.msra.mxu1 %v185_v19  ;;  %v182_v22 = vld [vmem:[#allocation7] sm:$0xff]  ;;  %v177_v32 = vperm.slane %v707_v2, 1  ;;  %v179_v35 = vperm.slane %v707_v2, 2  ;;  %v240_v48 = vld [vmem:[#allocation8 + $0x18] sm:$0xff] }
  0x1e   :  { %v186_v39 = vperm.slane %v707_v2, 3  ;;  %v239_v49 = vld [vmem:[#allocation8 + $0x10] sm:$0xff]  ;;  %257 = vmatpush.msra.mxu2 %v240_v48  ;;  %v238_v50 = vld [vmem:[#allocation8 + $0x8] sm:$0xff]  ;;  %v237_v51 = vld [vmem:[#allocation8] sm:$0xff]  ;;  %v232_v61 = vperm.slane %v707_v2, 4  ;;  %v234_v0 = vperm.slane %v707_v2, 5 }
  0x1f   :  { %203 = vmatpush.msra.mxu1 %v184_v20  ;;  %s409_s17 = sshll.u32 %s756_s8, 4  ;;  %s410_s17 = int_to_ptr.hbm [resolvable:$true] %s409_s17 }
  0x20   :  { %258 = vmatpush.msra.mxu2 %v239_v49  ;;  %v639_v49 = vmov 0  }
  0x21   :  { %204 = vmatpush.msra.mxu1 %v183_v21  ;;  %439 = vset.pattern.permute.xlu2 %v639_v49 }
  0x22   :  { %259 = vmatpush.msra.mxu2 %v238_v50  ;;  %440 = vset.pattern.permute.xlu1 %v639_v49 }
  0x23   :  { %v443_v8 = vpop.eup %442  ;;  %205 = vmatpush.msra.mxu1 %v182_v22  ;;  %441 = vset.pattern.permute.xlu0 %v639_v49 }
  0x24   :  { %v152_v9 = vmul.f32 32.0, %v443_v8  ;;  %vm156_vm2 = vweird.f32 %v443_v8  ;;  %260 = vmatpush.msra.mxu2 %v237_v51 }
  0x26   :  { %v153_v10 = vsub.f32 1.0, %v152_v9 }
  0x28   :  { %v154_v11 = vmul.f32 %v443_v8, %v153_v10 }
  0x2a   :  { %v155_v12 = vadd.f32 %v443_v8, %v154_v11 }
  0x2c   :  { %v711_v13 = vsel %vm156_vm2, %v443_v8, %v155_v12  ;;  %vm400_vm2 = vcmask 57344  }
  0x9a   :  { %v144_v4 = vpop.f32.mrf.mxu0 }
  0x9b   :  { %v145_v5 = vadd.f32 %v144_v4, %v122_v3 }
  0x9d   :  { %v148_v6 = vsel %vm147_vm1, %v145_v5, 0.0 }
  0x9e   :  { %149 = vadd.xlane.f32.xlu0 %v148_v6 }
 0x111   :  { %v150_v14 = vpop.xlane.xlu0 %149 }
 0x112   :  { %v158_v15 = vmul.f32 %v711_v13, %v150_v14 }
 0x114   :  { %v159_v16 = vsub.f32 %v145_v5, %v158_v15  ;;  %v241_v5 = vperm.slane %v707_v2, 6  ;;  %v295_v15 = vld [vmem:[#allocation10 + $0x18] sm:$0xff] }
 0x115   :  { %312 = vmatpush.msra.mxu3 %v295_v15 }
 0x116   :  { %v160_v17 = vmul.f32 %v159_v16, %v159_v16 }
 0x118   :  { %v161_v18 = vsel %vm147_vm1, %v160_v17, 0.0  ;;  %v293_v17 = vld [vmem:[#allocation10 + $0x8] sm:$0xff] }
 0x119   :  { %162 = vadd.xlane.f32.xlu0 %v161_v18  ;;  %v292_v18 = vld [vmem:[#allocation10] sm:$0xff] }
 0x18c   :  { %v163_v23 = vpop.xlane.xlu0 %162 }
 0x18d   :  { %v164_v24 = vmul.f32 %v163_v23, %v711_v13 }
 0x18f   :  { %v165_v25 = vadd.f32 1e-05, %v164_v24 }
 0x191   :  { %444 = vrsqrt.f32 %v165_v25  ;;  %vm172_vm4 = vweird.f32 %v165_v25 }
 0x197   :  { %v445_v26 = vpop.eup %444 }
 0x198   :  { %v167_v27 = vmul.f32 %v445_v26, %v165_v25  ;;  %vm173_vm3 = vweird.f32 %v445_v26 }
 0x199   :  { %vm174_vm5 = vmor %vm172_vm4, %vm173_vm3 }
 0x19a   :  { %v168_v28 = vmul.f32 %v445_v26, %v167_v27 }
 0x19c   :  { %v169_v29 = vmul.f32 0.5, %v168_v28  ;;  %v119_v28 = vld [vmem:[%s755_s7 + $0x8] sm:$0x7f] }
 0x19e   :  { %v170_v30 = vsub.f32 1.5, %v169_v29  ;;  %v287_v29 = vperm.slane %v707_v2, 7  ;;  %v346_v2 = vld [vmem:[%s749_s1] sm:$0xff]  ;;  %s640_s1 = smov [#allocation13]  }
 0x19f   :  { %s407_s14 = sshll.u32 %s640_s1, 4  ;;  %s408_s14 = int_to_ptr.vmem [resolvable:$true] %s407_s14 }
 0x1a0   :  { %v171_v31 = vmul.f32 %v445_v26, %v170_v30 }
 0x1a2   :  { %v175_v33 = vsel %vm174_vm5, %v445_v26, %v171_v31 }
 0x1a3   :  { %v176_v34 = vmul.f32 %v175_v33, %v159_v16  ;;  %v294_v16 = vld [vmem:[#allocation10 + $0x10] sm:$0xff] }
 0x1a4   :  { %313 = vmatpush.msra.mxu3 %v294_v16 }
 0x1a5   :  { %v178_v36 = vmul.f32 %v177_v32, %v176_v34  ;;  %v289_v32 = vperm.slane %v119_v28, 0 }
 0x1a6   :  { %314 = vmatpush.msra.mxu3 %v293_v17 }
 0x1a7   :  { %v180_v37 = vadd.f32 %v179_v35, %v178_v36  ;;  %v296_v36 = vperm.slane %v119_v28, 1 }
 0x1a8   :  { %315 = vmatpush.msra.mxu3 %v292_v18 }
 0x1a9   :  { %v181_v38 = vmax.f32 %v180_v37, 0.0 }
 0x1ab   :  { %423 = vmatmul.msk.f32.vlgmr.msra.gmra.mxu1 %vm147_vm1, %v181_v38 }
 0x228   :  { %v207_v40 = vpop.f32.mrf.mxu1 }
 0x229   :  { %v208_v41 = vadd.f32 %v207_v40, %v186_v39  ;;  %v347_v40 = vld [vmem:[#allocation11] sm:$0xf] }
 0x22a   :  { %426 = vmatpush.msk.msrb.mxu0 %vm353_vm12, %v347_v40 }
 0x22b   :  { %v210_v42 = vsel %vm147_vm1, %v208_v41, 0.0  ;;  %427 = vmatmul.msk.f32.vlgmr.msrb.gmra.mxu0 %vm349_vm13, %v346_v2 }
 0x22c   :  { %211 = vadd.xlane.f32.xlu1 %v210_v42 }
 0x29f   :  { %v212_v43 = vpop.xlane.xlu1 %211 }
 0x2a0   :  { %v213_v44 = vmul.f32 %v212_v43, %v711_v13 }
 0x2a2   :  { %v214_v45 = vsub.f32 %v208_v41, %v213_v44 }
 0x2a4   :  { %v215_v46 = vmul.f32 %v214_v45, %v214_v45 }
 0x2a6   :  { %v216_v47 = vsel %vm147_vm1, %v215_v46, 0.0 }
 0x2a7   :  { %217 = vadd.xlane.f32.xlu1 %v216_v47 }
 0x31a   :  { %v218_v52 = vpop.xlane.xlu1 %217 }
 0x31b   :  { %v219_v53 = vmul.f32 %v218_v52, %v711_v13 }
 0x31d   :  { %v220_v54 = vadd.f32 1e-05, %v219_v53 }
 0x31f   :  { %446 = vrsqrt.f32 %v220_v54  ;;  %vm227_vm7 = vweird.f32 %v220_v54 }
 0x325   :  { %v447_v55 = vpop.eup %446 }
 0x326   :  { %v222_v56 = vmul.f32 %v447_v55, %v220_v54  ;;  %vm228_vm6 = vweird.f32 %v447_v55  ;;  %v348_v54 = vperm.slane %v119_v28, 4 }
 0x327   :  { %vm229_vm8 = vmor %vm227_vm7, %vm228_vm6 }
 0x328   :  { %v223_v57 = vmul.f32 %v447_v55, %v222_v56  ;;  %v374_v56 = vpop.f32.mrf.mxu0 }
 0x32a   :  { %v224_v58 = vmul.f32 0.5, %v223_v57 }
 0x32c   :  { %v225_v59 = vsub.f32 1.5, %v224_v58  ;;  %v342_v58 = vperm.slane %v119_v28, 2 }
 0x32e   :  { %v226_v60 = vmul.f32 %v447_v55, %v225_v59 }
 0x330   :  { %v230_v62 = vsel %vm229_vm8, %v447_v55, %v226_v60 }
 0x331   :  { %v231_v63 = vmul.f32 %v230_v62, %v214_v45 }
 0x333   :  { %v233_v1 = vmul.f32 %v232_v61, %v231_v63  ;;  %v344_v61 = vperm.slane %v119_v28, 3 }
 0x335   :  { %v235_v3 = vadd.f32 %v234_v0, %v233_v1 }
 0x337   :  { %v236_v4 = vmax.f32 %v235_v3, 0.0  ;;  %v380_v3 = vperm.slane %v119_v28, 5 }
 0x339   :  { %424 = vmatmul.msk.f32.vlgmr.msra.gmra.mxu2 %vm147_vm1, %v236_v4 }
 0x3bc   :  { %v262_v6 = vpop.f32.mrf.mxu2 }
 0x3bd   :  { %v263_v7 = vadd.f32 %v262_v6, %v241_v5 }
 0x3bf   :  { %v265_v8 = vsel %vm147_vm1, %v263_v7, 0.0 }
 0x3c0   :  { %266 = vadd.xlane.f32.xlu2 %v265_v8 }
 0x433   :  { %v267_v9 = vpop.xlane.xlu2 %266 }
 0x434   :  { %v268_v10 = vmul.f32 %v267_v9, %v711_v13 }
 0x436   :  { %v269_v11 = vsub.f32 %v263_v7, %v268_v10 }
 0x438   :  { %v270_v12 = vmul.f32 %v269_v11, %v269_v11 }
 0x43a   :  { %v271_v14 = vsel %vm147_vm1, %v270_v12, 0.0 }
 0x43b   :  { %272 = vadd.xlane.f32.xlu2 %v271_v14 }
 0x453   :  { %387 = vperm.xlu2 %439, %v119_v28  }
 0x4ae   :  { %v273_v19 = vpop.xlane.xlu2 %272 }
 0x4af   :  { %v274_v20 = vmul.f32 %v273_v19, %v711_v13 }
 0x4b1   :  { %v275_v21 = vadd.f32 1e-05, %v274_v20 }
 0x4b3   :  { %448 = vrsqrt.f32 %v275_v21  ;;  %vm282_vm10 = vweird.f32 %v275_v21 }
 0x4b6   :  { %v388_v7 = vpop.permute.xlu2 %387 }
 0x4b7   :  { %v389_v8 = vperm.slane %v388_v7, 6 }
 0x4b9   :  { %v449_v22 = vpop.eup %448 }
 0x4ba   :  { %v277_v23 = vmul.f32 %v449_v22, %v275_v21  ;;  %vm283_vm9 = vweird.f32 %v449_v22 }
 0x4bb   :  { %vm284_vm11 = vmor %vm282_vm10, %vm283_vm9 }
 0x4bc   :  { %v278_v24 = vmul.f32 %v449_v22, %v277_v23 }
 0x4be   :  { %v279_v25 = vmul.f32 0.5, %v278_v24 }
 0x4c0   :  { %v280_v26 = vsub.f32 1.5, %v279_v25 }
 0x4c2   :  { %v281_v27 = vmul.f32 %v449_v22, %v280_v26 }
 0x4c4   :  { %v285_v30 = vsel %vm284_vm11, %v449_v22, %v281_v27 }
 0x4c5   :  { %v286_v31 = vmul.f32 %v285_v30, %v269_v11  ;;  %v396_v11 = vlaneseq }
 0x4c7   :  { %v288_v33 = vmul.f32 %v287_v29, %v286_v31  ;;  %v397_v12 = vand.u32 127, %v396_v11 }
 0x4c9   :  { %v290_v34 = vadd.f32 %v289_v32, %v288_v33 }
 0x4cb   :  { %v291_v35 = vmax.f32 %v290_v34, 0.0 }
 0x4cd   :  { %425 = vmatmul.msk.f32.vlgmr.msra.gmra.mxu3 %vm147_vm1, %v291_v35 }
 0x550   :  { %v317_v37 = vpop.f32.mrf.mxu3 }
 0x551   :  { %v318_v38 = vadd.f32 %v317_v37, %v296_v36 }
 0x553   :  { %v320_v39 = vsel %vm147_vm1, %v318_v38, 0.0 }
 0x554   :  { %321 = vadd.xlane.f32.xlu0 %v320_v39 }
 0x5c7   :  { %v322_v41 = vpop.xlane.xlu0 %321 }
 0x5c8   :  { %v323_v42 = vmul.f32 %v322_v41, %v711_v13 }
 0x5ca   :  { %v324_v43 = vsub.f32 %v318_v38, %v323_v42 }
 0x5cc   :  { %v325_v44 = vmul.f32 %v324_v43, %v324_v43 }
 0x5ce   :  { %v326_v45 = vsel %vm147_vm1, %v325_v44, 0.0 }
 0x5cf   :  { %327 = vadd.xlane.f32.xlu1 %v326_v45 }
 0x642   :  { %v328_v46 = vpop.xlane.xlu1 %327 }
 0x643   :  { %v329_v47 = vmul.f32 %v328_v46, %v711_v13  ;;  %v375_v13 = vadd.f32 %v374_v56, %v348_v54 }
 0x645   :  { %v330_v48 = vadd.f32 1e-05, %v329_v47  ;;  %v377_v63 = vmax.f32 %v375_v13, 0.0 }
 0x647   :  { %450 = vrsqrt.f32 %v330_v48  ;;  %vm337_vm15 = vweird.f32 %v330_v48 }
 0x64d   :  { %v451_v50 = vpop.eup %450 }
 0x64e   :  { %v332_v51 = vmul.f32 %v451_v50, %v330_v48  ;;  %vm338_vm14 = vweird.f32 %v451_v50 }
 0x64f   :  { %vm339_vm0 = vmor %vm337_vm15, %vm338_vm14 }
 0x650   :  { %v333_v52 = vmul.f32 %v451_v50, %v332_v51 }
 0x652   :  { %v334_v53 = vmul.f32 0.5, %v333_v52 }
 0x654   :  { %v335_v55 = vsub.f32 1.5, %v334_v53 }
 0x656   :  { %v336_v57 = vmul.f32 %v451_v50, %v335_v55 }
 0x658   :  { %v340_v59 = vsel %vm339_vm0, %v451_v50, %v336_v57 }
 0x659   :  { %v341_v60 = vmul.f32 %v340_v59, %v324_v43 }
 0x65b   :  { %v343_v62 = vmul.f32 %v342_v58, %v341_v60 }
 0x65d   :  { %v345_v0 = vadd.f32 %v344_v61, %v343_v62 }
 0x65f   :  { %v378_v1 = vadd.f32 %v377_v63, %v345_v0 }
 0x661   :  { %v379_v4 = vmax.f32 %v378_v1, 0.0 }
 0x663   :  { %v381_v5 = vmul.f32 %v380_v3, %v379_v4 }
 0x665   :  { %v382_v6 = vsel %vm147_vm1, %v381_v5, 0.0 }
 0x666   :  { %383 = vadd.xlane.f32.xlu0 %v382_v6 }
 0x6d9   :  { %v384_v9 = vpop.xlane.xlu0 %383 }
 0x6da   :  { %v391_v10 = vadd.f32 %v389_v8, %v384_v9 }
 0x6dc   :  { %394 = vperm.xlu1 %440, %v391_v10  }
 0x74e   :  { %v395_v14 = vpop.permute.xlu1 %394 }
 0x74f   :  { %v398_v15 = vperm.slane %v395_v14, %v397_v12 }
 0x751   :  { %401 = vst.msk [vmem:[#allocation13] sm:$0x1] %vm400_vm2, %v398_v15 }
 0x752   :  { %412 = dma.vmem_to_hbm [thread:$0]  %s408_s14, 16, %s410_s17, [#allocation4]  }
 0x753   :  { %628 = dma.done.wait [#allocation4], 16  }
 0x754   :  { %629 = vsyncadd [#allocation4], 4294967280 }
 0x755   :  { %417 = vsyncpa [#allocation3], 1 }
 0x756   :  { %418 = vsyncpa [#allocation6], 1 }
 0x757   :  { %419 = vsyncpa [#allocation9], 1 }
 0x758   :  { %420 = vsyncpa [#allocation12], 1 }
 0x759   :  { %421 = vsyncpa [#allocation4], 1 }

</bundles_post_ra>
